<compile_context>
chip_gen: v6e
topology: v6e:2x2x1
jax: 0.10.0
libtpu: 0.0.40
codegen_flags: <defaults>
</compile_context>

<pallas_src>
import functools
import math

import jax
import jax.numpy as jnp
import numpy as np
from jax import lax
from jax.experimental import pallas as pl
from jax.experimental.pallas import tpu as pltpu


# --------------------------------------------------------------------------
# helpers
# --------------------------------------------------------------------------
def _pool_out_size(L, k, s, ceil_mode):
    """Output size of a pooling dim, matching PyTorch (padding=0)."""
    if ceil_mode:
        o = math.ceil((L - k) / s) + 1
        # ensure the last pooling window starts inside the input
        if (o - 1) * s >= L:
            o -= 1
    else:
        o = (L - k) // s + 1
    return max(o, 0)


def _round_up(a, b):
    return (a + b - 1) // b * b


def _make_pool_matrix(H, W, kh, kw, sh, sw, OH, OW, n_pad):
    """Constant (H*W, n_pad) matrix: column (i*OW+j) holds kh*kw/clipped_size
    on the flattened positions of window (i,j); remaining columns are zero
    padding so the kernel's output block is a full 128-lane tile."""
    m = np.zeros((H * W, n_pad), np.float32)
    for i in range(OH):
        hs = i * sh
        he = min(hs + kh, H)
        for j in range(OW):
            ws = j * sw
            we = min(ws + kw, W)
            scale = float(kh * kw) / float((he - hs) * (we - ws))
            col = i * OW + j
            for h in range(hs, he):
                m[h * W + ws: h * W + we, col] = scale
    return m


@functools.lru_cache(maxsize=None)
def _per_gen_config():
    """Per-TPU-generation tiling caps / VMEM budgets (conservative fallback)."""
    kind = ""
    try:
        kind = jax.devices()[0].device_kind.lower()
    except Exception:
        pass
    if "v7" in kind:
        # 64 MiB physical VMEM, ~3.2 TB/s HBM: big tiles + >=2 grid steps.
        return dict(tile_cap=2048, vmem_budget=20 << 20, vmem_limit=40 << 20,
                    split2=True)
    if "v6" in kind or "trillium" in kind:
        return dict(tile_cap=2048, vmem_budget=20 << 20, vmem_limit=48 << 20,
                    split2=False)
    if "v5e" in kind or "v5 lite" in kind or "v5lite" in kind:
        # Lowest HBM BW -> memory-bound already; keep under scoped VMEM.
        return dict(tile_cap=1024, vmem_budget=10 << 20, vmem_limit=28 << 20,
                    split2=False)
    # Unknown generation: conservative defaults, no explicit VMEM override.
    return dict(tile_cap=1024, vmem_budget=8 << 20, vmem_limit=None,
                split2=False)


def _choose_batch_tile(B, L, cfg):
    """Batch tile: multiple of 8 (or the full B), sized so that
    ~4 f32 copies of the (tb, L) block (2 double-buffered DMA buffers +
    ~2 in-kernel temporaries) stay inside the per-generation VMEM budget."""
    budget = cfg["vmem_budget"]
    max_tb = max(8, budget // (16 * max(L, 1)))     # 16 = 4 copies * 4 bytes
    max_tb = max(8, (max_tb // 8) * 8)
    max_tb = min(max_tb, cfg["tile_cap"])
    if cfg["split2"] and B >= 16:
        # v7x: ensure >=2 grid steps so both TensorCores get sharded work.
        half = _round_up(-(-B // 2), 8)
        max_tb = min(max_tb, half)
    if B <= max_tb:
        return B                                    # single full-extent block
    return max_tb


# --------------------------------------------------------------------------
# kernel
# --------------------------------------------------------------------------
def _lppool_kernel(x_ref, m_ref, o_ref, *, p):
    # x_ref: (TB, L)   m_ref: (L, n_pad)   o_ref: (TB, n_pad)
    x = x_ref[...]
    if x.dtype != jnp.float32:
        x = x.astype(jnp.float32)

    if p == 1.0:
        xp = x                              # no extra (TB, L) temporary
    elif p == 2.0:
        xp = x * x
    elif float(p).is_integer():
        xp = lax.integer_pow(x, int(p))
    else:
        xp = jnp.power(x, p)

    # Pooling reduction on the MXU: scaling already folded into the matrix.
    s = jnp.dot(xp, m_ref[...], preferred_element_type=jnp.float32)

    if p == 1.0:
        out = s
    elif p == 2.0:
        out = jnp.sqrt(s)
    else:
        out = jnp.power(s, 1.0 / p)

    o_ref[...] = out.astype(o_ref.dtype)


def _lppool_flat(xf, m, norm_type, n_out):
    """Shared entry for 1D and 2D.  xf: (B, L), m: (L, n_pad) with n_pad%128==0."""
    B, L = xf.shape
    if n_out == 0 or B == 0:
        return jnp.zeros((B, n_out), xf.dtype)

    n_pad = m.shape[1]
    cfg = _per_gen_config()
    tb = _choose_batch_tile(B, L, cfg)
    grid = (pl.cdiv(B, tb),)                # ragged last block clipped by Pallas

    cp_kwargs = dict(dimension_semantics=("parallel",))
    if cfg["vmem_limit"] is not None:
        cp_kwargs["vmem_limit_bytes"] = cfg["vmem_limit"]

    out = pl.pallas_call(
        functools.partial(_lppool_kernel, p=float(norm_type)),
        out_shape=jax.ShapeDtypeStruct((B, n_pad), xf.dtype),
        grid=grid,
        in_specs=[
            pl.BlockSpec((tb, L), lambda i: (i, 0)),        # lane-dense input
            pl.BlockSpec((L, n_pad), lambda i: (0, 0)),     # constant pool matrix
        ],
        out_specs=pl.BlockSpec((tb, n_pad), lambda i: (i, 0)),  # 128-lane stores
        compiler_params=pltpu.CompilerParams(**cp_kwargs),
    )(xf, m)
    return out[:, :n_out]


# --------------------------------------------------------------------------
# module-level wrappers
# --------------------------------------------------------------------------
def lp_pool2d(x, norm_type, kernel_size, stride, ceil_mode):
    N, C, H, W = x.shape
    kh, kw = kernel_size
    sh, sw = stride
    OH = _pool_out_size(H, kh, sh, ceil_mode)
    OW = _pool_out_size(W, kw, sw, ceil_mode)
    n_out = OH * OW
    n_pad = max(128, _round_up(n_out, 128))
    m = jnp.asarray(_make_pool_matrix(H, W, kh, kw, sh, sw, OH, OW, n_pad))
    out = _lppool_flat(x.reshape(N * C, H * W), m, norm_type, n_out)
    return out.reshape(N, C, OH, OW)


def lp_pool1d(x, norm_type, kernel_size, stride, ceil_mode):
    N, C, L = x.shape
    OL = _pool_out_size(L, kernel_size, stride, ceil_mode)
    n_pad = max(128, _round_up(max(OL, 1), 128))
    m = jnp.asarray(_make_pool_matrix(1, L, 1, kernel_size, 1, stride, 1, OL, n_pad))
    out = _lppool_flat(x.reshape(N * C, L), m, norm_type, OL)
    return out.reshape(N, C, OL)


class LPPoolModel:
    """JAX/Pallas equivalent of the PyTorch lppool_model module."""

    def __init__(self, dim, norm_type, ceil_mode):
        self.dim = dim
        self.norm_type = norm_type
        self.ceil_mode = ceil_mode

    def __call__(self, x):
        if self.dim == 1:
            return lp_pool1d(x, self.norm_type, 8, 11, self.ceil_mode)
        return lp_pool2d(x, self.norm_type, (7, 8), (10, 11), self.ceil_mode)


# --------------------------------------------------------------------------
# reference (numpy, PyTorch semantics)
# --------------------------------------------------------------------------
def _ref_lppool2d(x, p, kh, kw, sh, sw, ceil_mode):
    N, C, H, W = x.shape
    OH = _pool_out_size(H, kh, sh, ceil_mode)
    OW = _pool_out_size(W, kw, sw, ceil_mode)
    xp = np.power(x.astype(np.float64), p)
    out = np.zeros((N, C, OH, OW), np.float64)
    for i in range(OH):
        for j in range(OW):
            hs, ws = i * sh, j * sw
            he, we = min(hs + kh, H), min(ws + kw, W)
            s = xp[:, :, hs:he, ws:we].sum(axis=(2, 3))
            avg = s / ((he - hs) * (we - ws))
            out[:, :, i, j] = np.power(avg * kh * kw, 1.0 / p)
    return out.astype(x.dtype)


if __name__ == "__main__":
    key = jax.random.PRNGKey(0)
    k1, k2 = jax.random.split(key)

    # ---- LPPool2d: kernel=(7,8), stride=(10,11) ----
    x2 = jax.random.normal(k1, (2, 4, 25, 26), dtype=jnp.float32)

    for ceil_mode in (False, True):
        model = LPPoolModel(dim=2, norm_type=2, ceil_mode=ceil_mode)
        y = jax.block_until_ready(model(x2))
        y_ref = _ref_lppool2d(np.asarray(x2), 2.0, 7, 8, 10, 11, ceil_mode)
        assert y.shape == y_ref.shape, (y.shape, y_ref.shape)
        np.testing.assert_allclose(np.asarray(y), y_ref, rtol=1e-4, atol=1e-5)

    # norm_type = 1 (sum pooling), exercises the no-root fast path
    model_l1 = LPPoolModel(dim=2, norm_type=1, ceil_mode=False)
    y = jax.block_until_ready(model_l1(x2))
    y_ref = _ref_lppool2d(np.asarray(x2), 1.0, 7, 8, 10, 11, False)
    np.testing.assert_allclose(np.asarray(y), y_ref, rtol=1e-4, atol=1e-5)

    # ---- LPPool1d: kernel=8, stride=11 ----
    x1 = jax.random.normal(k2, (2, 4, 30), dtype=jnp.float32)
    for ceil_mode in (False, True):
        model1 = LPPoolModel(dim=1, norm_type=2, ceil_mode=ceil_mode)
        y1 = jax.block_until_ready(model1(x1))
        y1_ref = _ref_lppool2d(
            np.asarray(x1)[:, :, None, :], 2.0, 1, 8, 1, 11, ceil_mode
        )
        np.testing.assert_allclose(
            np.asarray(y1), y1_ref.reshape(y1.shape), rtol=1e-4, atol=1e-5
        )

    print("KERNEL_OK")
</pallas_src>

<mosaic_0001>
module attributes {stable_mosaic.version = 11 : i64} {
  func.func @_lppool_kernel(%arg0: i32, %arg1: memref<8x650xf32, #tpu.memory_space<vmem>>, %arg2: memref<650x128xf32, #tpu.memory_space<vmem>>, %arg3: memref<8x128xf32, #tpu.memory_space<vmem>>) attributes {dimension_semantics = [#tpu.dimension_semantics<parallel>], iteration_bounds = array<i64: 1>, scalar_prefetch = 0 : i64, scratch_operands = 0 : i64, tpu.core_type = #tpu.core_type<tc>, window_params = [{transform_indices = @transform_0, window_bounds = array<i64: 8, 650>}, {pipeline_mode = #tpu.pipeline_mode<synchronous>, transform_indices = @transform_1, window_bounds = array<i64: 650, 128>}, {transform_indices = @transform_2, window_bounds = array<i64: 8, 128>}]} {
    %c0 = arith.constant 0 : index
    %c0_0 = arith.constant 0 : index
    %0 = vector.load %arg1[%c0, %c0_0] : memref<8x650xf32, #tpu.memory_space<vmem>>, vector<8x650xf32>
    %1 = arith.mulf %0, %0 : vector<8x650xf32>
    %c0_1 = arith.constant 0 : index
    %c0_2 = arith.constant 0 : index
    %2 = vector.load %arg2[%c0_1, %c0_2] : memref<650x128xf32, #tpu.memory_space<vmem>>, vector<650x128xf32>
    %cst = arith.constant dense<0.000000e+00> : vector<8x128xf32>
    %3 = tpu.matmul %1, %2, %cst {dimension_numbers = #tpu.dot_dimension_numbers<[1], [0], [0], [1], [0, 0, 1, 1], [], []>} : vector<8x650xf32>, vector<650x128xf32>, vector<8x128xf32> -> vector<8x128xf32>
    %4 = math.sqrt %3 : vector<8x128xf32>
    %c0_3 = arith.constant 0 : index
    %c0_4 = arith.constant 0 : index
    %5 = vector.load %arg3[%c0_3, %c0_4] : memref<8x128xf32, #tpu.memory_space<vmem>>, vector<8x128xf32>
    tpu.vector_store %arg3[%c0_3, %c0_4], %4 {strides = array<i32>} : memref<8x128xf32, #tpu.memory_space<vmem>>, vector<8x128xf32>,
    return
  }
  func.func @transform_0(%arg0: i32) -> (i32, i32) {
    %c0_i32 = arith.constant 0 : i32
    %c0_i32_0 = arith.constant 0 : i32
    return %arg0, %c0_i32 : i32, i32
  }
  func.func @transform_1(%arg0: i32) -> (i32, i32) {
    %c0_i32 = arith.constant 0 : i32
    %c0_i32_0 = arith.constant 0 : i32
    %c0_i32_1 = arith.constant 0 : i32
    return %c0_i32, %c0_i32_0 : i32, i32
  }
  func.func @transform_2(%arg0: i32) -> (i32, i32) {
    %c0_i32 = arith.constant 0 : i32
    %c0_i32_0 = arith.constant 0 : i32
    return %arg0, %c0_i32 : i32, i32
  }
}

</mosaic_0001>

<bundles_post_ra>
// kernel: tpu_custom_call.1
= control target key start
LH: loop header
LB: loop body
LE: loop exit
PB: predicated region body
PF: predicated region fallthrough
CT: control target
= control target key end

     0   :  { %7 = vsyncpa [#allocation3], 0  ;;  %s568_s0 = inlined_call_operand.hbm [shape: f32[8,650], index: 0, kind: input, shape index: {}]   ;;  %s569_s1 = inlined_call_operand.hbm [shape: f32[650,128], index: 1, kind: input, shape index: {}]   ;;  %s570_s2 = inlined_call_operand.hbm [shape: f32[8,128], index: 2, kind: output, shape index: {}]  }
   0x1   :  { %8 = vsyncpa [#allocation6], 0 }
   0x2   :  { %9 = vsyncpa [#allocation4], 0  ;;  %s520_s9 = smov [#allocation2]   ;;  %s521_s11 = smov [#allocation5]  }
   0x3   :  { %s16_s10 = sshll.u32 %s520_s9, 4  ;;  %s25_s12 = sshll.u32 %s521_s11, 4  ;;  %s17_s10 = int_to_ptr.vmem [resolvable:$true] %s16_s10  ;;  %s26_s12 = int_to_ptr.vmem [resolvable:$true] %s25_s12 }
   0x4   :  { %s462_s13 = scalar_lea.vmem %s17_s10, 768  ;;  %p467_p1 = scmp.lt.s32.totalorder %s17_s10, %s17_s10 }
   0x5   :  { %p463_p0 = scmp.ne.s32.totalorder %s17_s10, %s462_s13  ;;  %p468_p2 = scmp.lt.s32.totalorder %s462_s13, %s462_s13 }
   0x7   :  { %p469_p3 = por %p468_p2, %p467_p1 }
   0x9   :  { %p470_p4 = pnand %p469_p3, %p463_p0 }
   0xb   :  { %473 = shalt.err (!%p470_p4)
}
   0xc   :  { %19 = dma.hbm_to_vmem [thread:$0]  %s568_s0, 768, %s17_s10, [#allocation3]  }
   0xd   :  { %s482_s16 = scalar_lea.vmem %s26_s12, 10496  ;;  %p487_p6 = scmp.lt.s32.totalorder %s26_s12, %s26_s12 }
   0xe   :  { %p483_p5 = scmp.ne.s32.totalorder %s26_s12, %s482_s16  ;;  %p488_p7 = scmp.lt.s32.totalorder %s482_s16, %s482_s16 }
  0x10   :  { %p489_p8 = por %p488_p7, %p487_p6 }
  0x12   :  { %p490_p9 = pnand %p489_p8, %p483_p5 }
  0x14   :  { %493 = shalt.err (!%p490_p9)
}
  0x15   :  { %s522_s17 = smov 128   ;;  %s523_s18 = smov 8  }
  0x16   :  { %31 = dma.hbm_to_vmem [thread:$0]  %s569_s1, 10496, %s26_s12, [#allocation6], %s522_s17, %s522_s17, %s523_s18  }
  0x17   :  { %514 = dma.done.wait [#allocation3], 768  }
  0x18   :  { %515 = vsyncadd [#allocation3], 4294966528 }
  0x19   :  { %516 = dma.done.wait [#allocation6], 10496  }
  0x1a   :  { %517 = vsyncadd [#allocation6], 4294956800  ;;  %v524_v0 = vmov 0.0   ;;  %v81_v1 = vld [vmem:[#allocation5 + $0xf8] sm:$0xff]  ;;  %v80_v3 = vld [vmem:[#allocation5 + $0xf0] sm:$0xff]  ;;  %vm136_vm0 = vcmask 1041408  }
  0x1b   :  { %280 = vmatprep.subr.mxu0 %v524_v0  ;;  %v65_v2 = vld [vmem:[#allocation5 + $0x78] sm:$0xff]  ;;  %376 = vmatprep.subr.mxu1 %v81_v1  ;;  %v64_v4 = vld [vmem:[#allocation5 + $0x70] sm:$0xff]  ;;  %v79_v5 = vld [vmem:[#allocation5 + $0xe8] sm:$0xff]  ;;  %vm132_vm1 = vcmask 80896   ;;  %s525_s0 = smov [#allocation7]  }
  0x1c   :  { %377 = vmatpush3.msra.mxu1 %v65_v2  ;;  %v63_v6 = vld [vmem:[#allocation5 + $0x68] sm:$0xff]  ;;  %v78_v7 = vld [vmem:[#allocation5 + $0xe0] sm:$0xff]  ;;  %v77_v9 = vld [vmem:[#allocation5 + $0xd8] sm:$0xff]  ;;  %s364_s1 = sshll.u32 %s525_s0, 4  ;;  %s365_s1 = int_to_ptr.vmem [resolvable:$true] %s364_s1 }
  0x1d   :  { %378 = vmatprep.subr.mxu1 %v80_v3  ;;  %v62_v8 = vld [vmem:[#allocation5 + $0x60] sm:$0xff]  ;;  %v61_v10 = vld [vmem:[#allocation5 + $0x58] sm:$0xff]  ;;  %v76_v11 = vld [vmem:[#allocation5 + $0xd0] sm:$0xff]  ;;  %s494_s21 = scalar_lea.vmem %s365_s1, 128  ;;  %p499_p11 = scmp.lt.s32.totalorder %s365_s1, %s365_s1 }
  0x1e   :  { %379 = vmatpush3.msra.mxu1 %v64_v4  ;;  %v60_v12 = vld [vmem:[#allocation5 + $0x50] sm:$0xff]  ;;  %v75_v13 = vld [vmem:[#allocation5 + $0xc8] sm:$0xff]  ;;  %v39_v14 = vld [vmem:[#allocation2 + $0x8] sm:$0xff]  ;;  %p495_p10 = scmp.ne.s32.totalorder %s365_s1, %s494_s21  ;;  %p500_p12 = scmp.lt.s32.totalorder %s494_s21, %s494_s21 }
  0x1f   :  { %380 = vmatprep.subr.mxu1 %v79_v5  ;;  %v59_v15 = vld [vmem:[#allocation5 + $0x48] sm:$0xff]  ;;  %v45_v16 = vmul.f32 %v39_v14, %v39_v14  ;;  %v74_v17 = vld [vmem:[#allocation5 + $0xc0] sm:$0xff]  ;;  %v129_v18 = vld [vmem:[#allocation5 + $0x278] sm:$0xff] }
  0x20   :  { %381 = vmatpush3.msra.mxu1 %v63_v6  ;;  %v58_v19 = vld [vmem:[#allocation5 + $0x40] sm:$0xff]  ;;  %v128_v20 = vld [vmem:[#allocation5 + $0x270] sm:$0xff]  ;;  %v73_v21 = vld [vmem:[#allocation5 + $0xb8] sm:$0xff]  ;;  %281 = vmatpush1.msra.mxu0 %v129_v18  ;;  %p501_p13 = por %p500_p12, %p499_p11 }
  0x21   :  { %382 = vmatprep.subr.mxu1 %v78_v7  ;;  %204 = vmatprep.mubr.f32.mxu1 %v45_v16  ;;  %v57_v22 = vld [vmem:[#allocation5 + $0x38] sm:$0xff]  ;;  %v127_v23 = vld [vmem:[#allocation5 + $0x268] sm:$0xff]  ;;  %v72_v24 = vld [vmem:[#allocation5 + $0xb0] sm:$0xff] }
  0x22   :  { %383 = vmatpush3.msra.mxu1 %v62_v8  ;;  %282 = vmatprep.subr.mxu0 %v524_v0  ;;  %v56_v25 = vld [vmem:[#allocation5 + $0x30] sm:$0xff]  ;;  %v126_v26 = vld [vmem:[#allocation5 + $0x260] sm:$0xff]  ;;  %v71_v27 = vld [vmem:[#allocation5 + $0xa8] sm:$0xff]  ;;  %p502_p0 = pnand %p501_p13, %p495_p10 }
  0x23   :  { %384 = vmatprep.subr.mxu1 %v77_v9  ;;  %283 = vmatpush1.msra.mxu0 %v128_v20  ;;  %v55_v28 = vld [vmem:[#allocation5 + $0x28] sm:$0xff]  ;;  %v125_v29 = vld [vmem:[#allocation5 + $0x258] sm:$0xff]  ;;  %v70_v30 = vld [vmem:[#allocation5 + $0xa0] sm:$0xff] }
  0x24   :  { %385 = vmatpush3.msra.mxu1 %v61_v10  ;;  %284 = vmatprep.subr.mxu0 %v524_v0  ;;  %v54_v31 = vld [vmem:[#allocation5 + $0x20] sm:$0xff]  ;;  %v124_v32 = vld [vmem:[#allocation5 + $0x250] sm:$0xff]  ;;  %v69_v33 = vld [vmem:[#allocation5 + $0x98] sm:$0xff] }
  0x25   :  { %386 = vmatprep.subr.mxu1 %v76_v11  ;;  %285 = vmatpush1.msra.mxu0 %v127_v23  ;;  %v53_v34 = vld [vmem:[#allocation5 + $0x18] sm:$0xff]  ;;  %v123_v35 = vld [vmem:[#allocation5 + $0x248] sm:$0xff]  ;;  %v68_v36 = vld [vmem:[#allocation5 + $0x90] sm:$0xff] }
  0x26   :  { %387 = vmatpush3.msra.mxu1 %v60_v12  ;;  %286 = vmatprep.subr.mxu0 %v524_v0  ;;  %v52_v37 = vld [vmem:[#allocation5 + $0x10] sm:$0xff]  ;;  %v122_v38 = vld [vmem:[#allocation5 + $0x240] sm:$0xff]  ;;  %v67_v39 = vld [vmem:[#allocation5 + $0x88] sm:$0xff] }
  0x27   :  { %388 = vmatprep.subr.mxu1 %v75_v13  ;;  %287 = vmatpush1.msra.mxu0 %v126_v26  ;;  %v38_v40 = vld [vmem:[#allocation2] sm:$0xff]  ;;  %v51_v41 = vld [vmem:[#allocation5 + $0x8] sm:$0xff]  ;;  %v121_v42 = vld [vmem:[#allocation5 + $0x238] sm:$0xff] }
  0x28   :  { %389 = vmatpush3.msra.mxu1 %v59_v15  ;;  %288 = vmatprep.subr.mxu0 %v524_v0  ;;  %v66_v43 = vld [vmem:[#allocation5 + $0x80] sm:$0xff]  ;;  %v44_v45 = vmul.f32 %v38_v40, %v38_v40  ;;  %v120_v46 = vld [vmem:[#allocation5 + $0x230] sm:$0xff]  ;;  %v113_v47 = vld [vmem:[#allocation5 + $0x1f8] sm:$0xff] }
  0x29   :  { %390 = vmatprep.subr.mxu1 %v74_v17  ;;  %289 = vmatpush1.msra.mxu0 %v125_v29  ;;  %v50_v44 = vld [vmem:[#allocation5] sm:$0xff]  ;;  %v97_v48 = vld [vmem:[#allocation5 + $0x178] sm:$0xff]  ;;  %v112_v49 = vld [vmem:[#allocation5 + $0x1f0] sm:$0xff] }
  0x2a   :  { %391 = vmatpush3.msra.mxu1 %v58_v19  ;;  %290 = vmatprep.subr.mxu0 %v524_v0  ;;  %v119_v50 = vld [vmem:[#allocation5 + $0x228] sm:$0xff]  ;;  %v96_v51 = vld [vmem:[#allocation5 + $0x170] sm:$0xff]  ;;  %v118_v53 = vld [vmem:[#allocation5 + $0x220] sm:$0xff] }
  0x2b   :  { %392 = vmatprep.subr.mxu1 %v73_v21  ;;  %291 = vmatpush1.msra.mxu0 %v124_v32  ;;  %v111_v52 = vld [vmem:[#allocation5 + $0x1e8] sm:$0xff]  ;;  %v110_v55 = vld [vmem:[#allocation5 + $0x1e0] sm:$0xff]  ;;  %v117_v56 = vld [vmem:[#allocation5 + $0x218] sm:$0xff] }
  0x2c   :  { %393 = vmatpush3.msra.mxu1 %v57_v22  ;;  %292 = vmatprep.subr.mxu0 %v524_v0  ;;  %v95_v54 = vld [vmem:[#allocation5 + $0x168] sm:$0xff]  ;;  %v94_v57 = vld [vmem:[#allocation5 + $0x160] sm:$0xff]  ;;  %v109_v58 = vld [vmem:[#allocation5 + $0x1d8] sm:$0xff] }
  0x2d   :  { %394 = vmatprep.subr.mxu1 %v72_v24  ;;  %293 = vmatpush1.msra.mxu0 %v123_v35  ;;  %v116_v59 = vld [vmem:[#allocation5 + $0x210] sm:$0xff]  ;;  %v41_v60 = vld [vmem:[#allocation2 + $0x18] sm:$0xff]  ;;  %v93_v61 = vld [vmem:[#allocation5 + $0x158] sm:$0xff] }
  0x2e   :  { %395 = vmatpush3.msra.mxu1 %v56_v25  ;;  %294 = vmatprep.subr.mxu0 %v524_v0  ;;  %v108_v62 = vld [vmem:[#allocation5 + $0x1d0] sm:$0xff]  ;;  %v115_v63 = vld [vmem:[#allocation5 + $0x208] sm:$0xff]  ;;  %v47_v2 = vmul.f32 %v41_v60, %v41_v60  ;;  %v114_v5 = vld [vmem:[#allocation5 + $0x200] sm:$0xff] }
  0x2f   :  { %396 = vmatprep.subr.mxu1 %v71_v27  ;;  %295 = vmatpush1.msra.mxu0 %v122_v38  ;;  %v92_v1 = vld [vmem:[#allocation5 + $0x150] sm:$0xff]  ;;  %v107_v3 = vld [vmem:[#allocation5 + $0x1c8] sm:$0xff]  ;;  %v106_v6 = vld [vmem:[#allocation5 + $0x1c0] sm:$0xff] }
  0x30   :  { %397 = vmatpush3.msra.mxu1 %v55_v28  ;;  %296 = vmatprep.subr.mxu0 %v524_v0  ;;  %v91_v4 = vld [vmem:[#allocation5 + $0x148] sm:$0xff]  ;;  %v43_v7 = vld [vmem:[#allocation2 + $0x28] sm:$0xff]  ;;  %v90_v8 = vld [vmem:[#allocation5 + $0x140] sm:$0xff] }
  0x31   :  { %398 = vmatprep.subr.mxu1 %v70_v30  ;;  %297 = vmatpush1.msra.mxu0 %v121_v42  ;;  %v131_v9 = vld [vmem:[#allocation5 + $0x288] sm:$0x3]  ;;  %v42_v10 = vld [vmem:[#allocation2 + $0x20] sm:$0xff]  ;;  %v105_v11 = vld [vmem:[#allocation5 + $0x1b8] sm:$0xff]  ;;  %v49_v14 = vmul.f32 %v43_v7, %v43_v7 }
  0x32   :  { %399 = vmatpush3.msra.mxu1 %v54_v31  ;;  %298 = vmatprep.subr.mxu0 %v524_v0  ;;  %v89_v12 = vld [vmem:[#allocation5 + $0x138] sm:$0xff]  ;;  %v130_v13 = vld [vmem:[#allocation5 + $0x280] sm:$0xff]  ;;  %v104_v15 = vld [vmem:[#allocation5 + $0x1b0] sm:$0xff]  ;;  %v48_v16 = vmul.f32 %v42_v10, %v42_v10 }
  0x33   :  { %400 = vmatprep.subr.mxu1 %v69_v33  ;;  %299 = vmatpush1.msra.mxu0 %v120_v46  ;;  %v88_v17 = vld [vmem:[#allocation5 + $0x130] sm:$0xff]  ;;  %v103_v18 = vld [vmem:[#allocation5 + $0x1a8] sm:$0xff]  ;;  %v102_v20 = vld [vmem:[#allocation5 + $0x1a0] sm:$0xff] }
  0x34   :  { %401 = vmatpush3.msra.mxu1 %v53_v34  ;;  %300 = vmatprep.subr.mxu0 %v524_v0  ;;  %v87_v19 = vld [vmem:[#allocation5 + $0x128] sm:$0xff]  ;;  %v86_v21 = vld [vmem:[#allocation5 + $0x120] sm:$0xff]  ;;  %v101_v22 = vld [vmem:[#allocation5 + $0x198] sm:$0xff] }
  0x35   :  { %402 = vmatprep.subr.mxu1 %v68_v36  ;;  %301 = vmatpush1.msra.mxu0 %v119_v50  ;;  %v85_v23 = vld [vmem:[#allocation5 + $0x118] sm:$0xff]  ;;  %v100_v24 = vld [vmem:[#allocation5 + $0x190] sm:$0xff]  ;;  %v40_v26 = vld [vmem:[#allocation2 + $0x10] sm:$0xff] }
  0x36   :  { %403 = vmatpush3.msra.mxu1 %v52_v37  ;;  %302 = vmatprep.subr.mxu0 %v524_v0  ;;  %v84_v25 = vld [vmem:[#allocation5 + $0x110] sm:$0xff]  ;;  %v83_v27 = vld [vmem:[#allocation5 + $0x108] sm:$0xff]  ;;  %v98_v28 = vld [vmem:[#allocation5 + $0x180] sm:$0xff]  ;;  %v46_v30 = vmul.f32 %v40_v26, %v40_v26 }
  0x37   :  { %404 = vmatprep.subr.mxu1 %v67_v39  ;;  %303 = vmatpush1.msra.mxu0 %v118_v53  ;;  %v82_v29 = vld [vmem:[#allocation5 + $0x100] sm:$0xff] }
  0x38   :  { %405 = vmatpush3.msra.mxu1 %v51_v41  ;;  %304 = vmatprep.subr.mxu0 %v524_v0 }
  0x39   :  { %406 = vmatprep.subr.mxu1 %v66_v43  ;;  %305 = vmatpush1.msra.mxu0 %v117_v56 }
  0x3a   :  { %407 = vmatpush3.msra.mxu1 %v50_v44  ;;  %306 = vmatprep.subr.mxu0 %v524_v0 }
  0x3b   :  { %205 = vmatmul.mubr.f32.vlgmr.msra.gmra.mxu1 %v44_v45  ;;  %411 = vmatprep.subr.mxu1 %v113_v47 }
  0x3c   :  { %412 = vmatpush3.msra.mxu1 %v97_v48  ;;  %307 = vmatpush1.msra.mxu0 %v116_v59 }
  0x3d   :  { %413 = vmatprep.subr.mxu1 %v112_v49  ;;  %308 = vmatprep.subr.mxu0 %v524_v0 }
  0x3e   :  { %414 = vmatpush3.msra.mxu1 %v96_v51  ;;  %309 = vmatpush1.msra.mxu0 %v115_v63 }
  0x3f   :  { %415 = vmatprep.subr.mxu1 %v111_v52  ;;  %310 = vmatprep.subr.mxu0 %v524_v0 }
  0x40   :  { %416 = vmatpush3.msra.mxu1 %v95_v54  ;;  %274 = vmatprep.mubr.f32.mxu1 %v47_v2 }
  0x41   :  { %417 = vmatprep.subr.mxu1 %v110_v55  ;;  %311 = vmatpush1.msra.mxu0 %v114_v5 }
  0x42   :  { %418 = vmatpush3.msra.mxu1 %v94_v57  ;;  %340 = vmatprep.subr.mxu0 %v524_v0 }
  0x43   :  { %419 = vmatprep.subr.mxu1 %v109_v58  ;;  %374 = vmatpush2.msk.msra.mxu0 %vm136_vm0, %v131_v9 }
  0x44   :  { %420 = vmatpush3.msra.mxu1 %v93_v61  ;;  %342 = vmatprep.subr.mxu0 %v524_v0  ;;  %v99_v0 = vld [vmem:[#allocation5 + $0x188] sm:$0xff] }
  0x45   :  { %421 = vmatprep.subr.mxu1 %v108_v62  ;;  %343 = vmatpush2.msra.mxu0 %v130_v13 }
  0x46   :  { %422 = vmatpush3.msra.mxu1 %v92_v1  ;;  %375 = vmatprep.mubr.msk.f32.mxu0 %vm132_vm1, %v49_v14 }
  0x47   :  { %423 = vmatprep.subr.mxu1 %v107_v3  ;;  %345 = vmatmul.mubr.f32.vlgmr.msra.gmra.mxu0 %v48_v16 }
  0x48   :  { %424 = vmatpush3.msra.mxu1 %v91_v4 }
  0x49   :  { %425 = vmatprep.subr.mxu1 %v106_v6 }
  0x4a   :  { %426 = vmatpush3.msra.mxu1 %v90_v8 }
  0x4b   :  { %427 = vmatprep.subr.mxu1 %v105_v11 }
  0x4c   :  { %428 = vmatpush3.msra.mxu1 %v89_v12 }
  0x4d   :  { %429 = vmatprep.subr.mxu1 %v104_v15 }
  0x4e   :  { %430 = vmatpush3.msra.mxu1 %v88_v17 }
  0x4f   :  { %431 = vmatprep.subr.mxu1 %v103_v18 }
  0x50   :  { %432 = vmatpush3.msra.mxu1 %v87_v19 }
  0x51   :  { %433 = vmatprep.subr.mxu1 %v102_v20 }
  0x52   :  { %434 = vmatpush3.msra.mxu1 %v86_v21 }
  0x53   :  { %435 = vmatprep.subr.mxu1 %v101_v22 }
  0x54   :  { %436 = vmatpush3.msra.mxu1 %v85_v23 }
  0x55   :  { %437 = vmatprep.subr.mxu1 %v100_v24 }
  0x56   :  { %438 = vmatpush3.msra.mxu1 %v84_v25 }
  0x57   :  { %439 = vmatprep.subr.mxu1 %v99_v0 }
  0x58   :  { %440 = vmatpush3.msra.mxu1 %v83_v27 }
  0x59   :  { %441 = vmatprep.subr.mxu1 %v98_v28 }
  0x5a   :  { %442 = vmatpush3.msra.mxu1 %v82_v29 }
  0x5b   :  { %275 = vmatmul.mubr.f32.vlgmr.msra.gmra.mxu1 %v46_v30 }
  0xfb   :  { %v408_v33 = vpop.f32.mrf.mxu1 }
  0xfd   :  { %v409_v34 = vpop.f32.mrf.mxu1 }
  0xfe   :  { %v410_v37 = vadd.f32 %v409_v34, %v408_v33 }
 0x107   :  { %v346_v31 = vpop.f32.mrf.mxu0 }
 0x109   :  { %v348_v32 = vpop.f32.mrf.mxu0 }
 0x11b   :  { %v443_v35 = vpop.f32.mrf.mxu1 }
 0x11d   :  { %v444_v36 = vpop.f32.mrf.mxu1 }
 0x11e   :  { %v445_v38 = vadd.f32 %v444_v36, %v443_v35 }
 0x120   :  { %v277_v39 = vadd.f32 %v445_v38, %v410_v37 }
 0x122   :  { %v347_v40 = vadd.f32 %v346_v31, %v277_v39 }
 0x124   :  { %452 = vrsqrt.f32 %v347_v40  ;;  %vm352_vm2 = vcmp.eq.f32.partialorder %v347_v40, inf  ;;  %v355_v43 = vand.u32 2147483648, %v347_v40  ;;  %vm354_vm3 = vcmp.eq.f32.partialorder %v347_v40, 0.0 }
 0x131   :  { %v453_v41 = vpop.eup %452 }
 0x132   :  { %v351_v42 = vmul.f32 %v453_v41, %v347_v40 }
 0x134   :  { %v353_v44 = vsel %vm352_vm2, %v347_v40, %v351_v42 }
 0x135   :  { %v356_v45 = vsel %vm354_vm3, %v355_v43, %v353_v44 }
 0x136   :  { %357 = vst [vmem:[#allocation7] sm:$0xff] %v356_v45 }
 0x137   :  { %505 = shalt.err (!%p502_p0)
}
 0x138   :  { %367 = dma.vmem_to_hbm [thread:$0]  %s365_s1, 128, %s570_s2, [#allocation4]  }
 0x139   :  { %518 = dma.done.wait [#allocation4], 128  }
 0x13a   :  { %519 = vsyncadd [#allocation4], 4294967168 }
 0x13b   :  { %371 = vsyncpa [#allocation3], 1 }
 0x13c   :  { %372 = vsyncpa [#allocation6], 1 }
 0x13d   :  { %373 = vsyncpa [#allocation4], 1 }

</bundles_post_ra>
